<compile_context>
chip_gen: v5e
topology: v5e:2x2
jax: 0.10.0
libtpu: 0.0.40
codegen_flags: <defaults>
</compile_context>

<pallas_src>
import functools

import jax
import jax.numpy as jnp
from jax.experimental import pallas as pl
from jax.experimental.pallas import tpu as pltpu


def _round_up(x, m):
    return (x + m - 1) // m * m


def _sublane_multiple(dtype):
    # f32 -> 8, bf16 -> 16, int8/fp8 -> 32
    return max(8, 32 // jnp.dtype(dtype).itemsize)


def _mlp_heads_kernel(*refs, num_heads, output_gates):
    """One batch tile of x through `num_heads` independent 3-layer MLP heads.

    refs = (x_ref, [w1,b1,w2,b2,w3,b3] * num_heads, [o_ref] * num_heads)
    """
    x_ref = refs[0]
    head_refs = refs[1:1 + 6 * num_heads]
    out_refs = refs[1 + 6 * num_heads:]

    for h in range(num_heads):
        w1, b1, w2, b2, w3, b3 = head_refs[6 * h: 6 * h + 6]
        o_ref = out_refs[h]
        cd = w1.dtype                       # MXU operand dtype (f32 or bf16)

        a = x_ref[...].astype(cd)
        # linear1 + relu (f32 accumulation; bias/relu math in f32 -> v5e-safe)
        a = jnp.dot(a, w1[...], preferred_element_type=jnp.float32) + b1[...]
        a = jnp.maximum(a, 0.0).astype(cd)
        # linear2 + relu
        a = jnp.dot(a, w2[...], preferred_element_type=jnp.float32) + b2[...]
        a = jnp.maximum(a, 0.0).astype(cd)
        # linear3 (+ optional gate, e.g. tanh -> EUP) on real lanes only
        out = jnp.dot(a, w3[...], preferred_element_type=jnp.float32) + b3[...]
        gate = output_gates[h]
        if gate is not None:
            out = gate(out)
        o_ref[...] = out.astype(o_ref.dtype)


def init_params(key, state_size, output_size, hidden_size, dtype=jnp.float32):
    """Deterministic init mimicking nn.Linear's U(-1/sqrt(fan_in), 1/sqrt(fan_in))."""
    keys = jax.random.split(key, 6)

    def linear(kw, kb, fan_in, fan_out):
        bound = 1.0 / jnp.sqrt(jnp.array(fan_in, dtype))
        w = jax.random.uniform(kw, (fan_in, fan_out), dtype, -bound, bound)
        b = jax.random.uniform(kb, (1, fan_out), dtype, -bound, bound)
        return w, b

    w1, b1 = linear(keys[0], keys[1], state_size, hidden_size)
    w2, b2 = linear(keys[2], keys[3], hidden_size, hidden_size)
    w3, b3 = linear(keys[4], keys[5], hidden_size, output_size)
    return {"w1": w1, "b1": b1, "w2": w2, "b2": b2, "w3": w3, "b3": b3}


def cast_params(params, compute_dtype):
    """Cast weight matrices to the MXU operand dtype (bf16 on v6e/v7x).

    Biases stay f32 so bias-add / relu / gate math stays f32. No padding:
    full-extent feature dims are legal block shapes and keep DMA/writeback minimal.
    """
    out = dict(params)
    for k in ("w1", "w2", "w3"):
        out[k] = params[k].astype(compute_dtype)
    return out


def fully_connected_heads(x, params_list, output_gates=None, block_rows=1024):
    """Fused forward for one or more 3-layer MLP heads sharing the same input x.

    x: (batch, state_size), f32 or bf16 (output matches x.dtype).
    params_list: list of dicts from init_params()/cast_params().
    Returns a list of (batch, out_size_h) arrays (or a single array for one head).
    """
    num_heads = len(params_list)
    if output_gates is None:
        output_gates = (None,) * num_heads
    output_gates = tuple(output_gates)
    assert len(output_gates) == num_heads

    batch, state_size = x.shape
    io_dtype = x.dtype
    io_item = jnp.dtype(io_dtype).itemsize
    sub = _sublane_multiple(io_dtype)

    # Batch tile: big enough to amortize ~0.35us/step grid overhead, but keep at
    # least 2 tiles for rollout-sized batches so the "parallel" axis can shard
    # across both TensorCores on v7x. Weights stay VMEM-resident across steps.
    tm = min(block_rows, _round_up(batch, sub))
    if batch >= 2 * sub and pl.cdiv(batch, tm) < 2:
        tm = _round_up(pl.cdiv(batch, 2), sub)
    batch_p = _round_up(batch, tm)
    grid = (batch_p // tm,)

    # Only batch-row padding (zero rows, sliced off afterwards). No feature padding.
    xp = x if batch_p == batch else jnp.pad(x, ((0, batch_p - batch), (0, 0)))

    def const_spec(arr):
        # Full-array block with a constant index_map: stays VMEM-resident.
        return pl.BlockSpec(arr.shape, lambda i: (0, 0))

    in_specs = [pl.BlockSpec((tm, state_size), lambda i: (i, 0))]
    in_args = [xp]
    out_specs, out_shapes = [], []
    flops = 0
    transcendentals = 0
    weight_bytes = 0
    out_cols = 0
    hidden_max = 1

    for params, gate in zip(params_list, output_gates):
        w1, b1, w2, b2, w3, b3 = (params[k] for k in ("w1", "b1", "w2", "b2", "w3", "b3"))
        S, H = w1.shape
        O = w3.shape[1]
        assert S == state_size, "state_size mismatch between x and params"
        for a in (w1, b1, w2, b2, w3, b3):
            in_specs.append(const_spec(a))
            in_args.append(a)
            weight_bytes += a.size * jnp.dtype(a.dtype).itemsize
        out_specs.append(pl.BlockSpec((tm, O), lambda i: (i, 0)))
        out_shapes.append(jax.ShapeDtypeStruct((batch_p, O), io_dtype))
        flops += 2 * batch_p * (S * H + H * H + H * O)
        if gate is not None:
            transcendentals += batch_p * O
        out_cols += O
        hidden_max = max(hidden_max, H)

    # Honest VMEM footprint: double-buffered x/out tiles, double-buffered resident
    # weights (tiny here), live f32 activations, plus fixed headroom. No 32 MiB floor.
    vmem_bytes = int(2 * tm * (state_size + out_cols) * io_item
                     + 2 * weight_bytes
                     + 2 * tm * hidden_max * 4
                     + (8 << 20))

    cost = pl.CostEstimate(
        flops=flops,
        transcendentals=transcendentals,
        bytes_accessed=(batch * state_size * io_item
                        + weight_bytes
                        + batch * out_cols * io_item),
    )

    kernel = functools.partial(_mlp_heads_kernel,
                               num_heads=num_heads, output_gates=output_gates)

    outs = pl.pallas_call(
        kernel,
        out_shape=tuple(out_shapes),
        grid=grid,
        in_specs=in_specs,
        out_specs=tuple(out_specs),
        compiler_params=pltpu.CompilerParams(
            dimension_semantics=("parallel",),   # batch tiles shard across TCs on v7x
            vmem_limit_bytes=vmem_bytes,
        ),
        cost_estimate=cost,
    )(*in_args)

    outs = [o[:batch] for o in outs]
    return outs if num_heads > 1 else outs[0]


def fully_connected_network(x, params, output_gate=None, block_rows=1024):
    """Single-head forward matching the PyTorch FullyConnectedNetwork module."""
    return fully_connected_heads(x, [params], (output_gate,), block_rows=block_rows)


def _reference(x, params, output_gate=None):
    h = jnp.maximum(x @ params["w1"] + params["b1"], 0.0)
    h = jnp.maximum(h @ params["w2"] + params["b2"], 0.0)
    out = h @ params["w3"] + params["b3"]
    if output_gate is not None:
        out = output_gate(out)
    return out


if __name__ == "__main__":
    key = jax.random.PRNGKey(0)
    k_a, k_c, k_x, k_xl = jax.random.split(key, 4)

    batch, state_size, hidden_size, action_size = 8, 32, 32, 4
    actor_params = init_params(k_a, state_size, action_size, hidden_size)
    critic_params = init_params(k_c, state_size, 1, hidden_size)
    x = jax.random.normal(k_x, (batch, state_size), jnp.float32)

    # Actor-style network: tanh output gate, tiny batch.
    out_a = jax.block_until_ready(
        fully_connected_network(x, actor_params, output_gate=jnp.tanh))
    ref_a = _reference(x, actor_params, jnp.tanh)
    assert out_a.shape == (batch, action_size)
    assert jnp.allclose(out_a, ref_a, atol=1e-5, rtol=1e-5), "mismatch (actor)"

    # Critic-style network: no gate, scalar output.
    out_c = jax.block_until_ready(fully_connected_network(x, critic_params))
    ref_c = _reference(x, critic_params, None)
    assert out_c.shape == (batch, 1)
    assert jnp.allclose(out_c, ref_c, atol=1e-5, rtol=1e-5), "mismatch (critic)"

    # Fused PPO actor + critic: ONE pallas_call, shared x tile.
    fa, fc = jax.block_until_ready(
        fully_connected_heads(x, [actor_params, critic_params], (jnp.tanh, None)))
    assert jnp.allclose(fa, ref_a, atol=1e-5, rtol=1e-5), "mismatch (fused actor)"
    assert jnp.allclose(fc, ref_c, atol=1e-5, rtol=1e-5), "mismatch (fused critic)"

    # Rollout-sized batch: one pallas_call, >=2 parallel batch tiles (v7x megacore).
    xl = jax.random.normal(k_xl, (1024, state_size), jnp.float32)
    out_l = jax.block_until_ready(
        fully_connected_network(xl, actor_params, output_gate=jnp.tanh))
    ref_l = _reference(xl, actor_params, jnp.tanh)
    assert jnp.allclose(out_l, ref_l, atol=1e-5, rtol=1e-5), "mismatch (rollout)"

    # bf16 I/O + bf16 weights (v6e/v7x path): f32 accumulation, f32 bias/relu/gate.
    actor_bf16 = cast_params(actor_params, jnp.bfloat16)
    out_bf16 = jax.block_until_ready(
        fully_connected_network(xl.astype(jnp.bfloat16), actor_bf16,
                                output_gate=jnp.tanh))
    assert out_bf16.dtype == jnp.bfloat16
    assert jnp.allclose(out_bf16.astype(jnp.float32), ref_l,
                        atol=5e-2, rtol=5e-2), "mismatch (bf16)"

    print("KERNEL_OK")
</pallas_src>

<mosaic_0001>
module attributes {stable_mosaic.version = 11 : i64} {
  func.func @_mlp_heads_kernel(%arg0: i32, %arg1: memref<8x32xf32, #tpu.memory_space<vmem>>, %arg2: memref<32x32xf32, #tpu.memory_space<vmem>>, %arg3: memref<1x32xf32, #tpu.memory_space<vmem>>, %arg4: memref<32x32xf32, #tpu.memory_space<vmem>>, %arg5: memref<1x32xf32, #tpu.memory_space<vmem>>, %arg6: memref<32x4xf32, #tpu.memory_space<vmem>>, %arg7: memref<1x4xf32, #tpu.memory_space<vmem>>, %arg8: memref<8x4xf32, #tpu.memory_space<vmem>>) attributes {dimension_semantics = [#tpu.dimension_semantics<parallel>], iteration_bounds = array<i64: 1>, scalar_prefetch = 0 : i64, scratch_operands = 0 : i64, tpu.core_type = #tpu.core_type<tc>, window_params = [{transform_indices = @transform_0, window_bounds = array<i64: 8, 32>}, {pipeline_mode = #tpu.pipeline_mode<synchronous>, transform_indices = @transform_1, window_bounds = array<i64: 32, 32>}, {pipeline_mode = #tpu.pipeline_mode<synchronous>, transform_indices = @transform_2, window_bounds = array<i64: 1, 32>}, {pipeline_mode = #tpu.pipeline_mode<synchronous>, transform_indices = @transform_3, window_bounds = array<i64: 32, 32>}, {pipeline_mode = #tpu.pipeline_mode<synchronous>, transform_indices = @transform_4, window_bounds = array<i64: 1, 32>}, {pipeline_mode = #tpu.pipeline_mode<synchronous>, transform_indices = @transform_5, window_bounds = array<i64: 32, 4>}, {pipeline_mode = #tpu.pipeline_mode<synchronous>, transform_indices = @transform_6, window_bounds = array<i64: 1, 4>}, {transform_indices = @transform_7, window_bounds = array<i64: 8, 4>}]} {
    %c0 = arith.constant 0 : index
    %c0_0 = arith.constant 0 : index
    %0 = vector.load %arg1[%c0, %c0_0] : memref<8x32xf32, #tpu.memory_space<vmem>>, vector<8x32xf32>
    %c0_1 = arith.constant 0 : index
    %c0_2 = arith.constant 0 : index
    %1 = vector.load %arg2[%c0_1, %c0_2] : memref<32x32xf32, #tpu.memory_space<vmem>>, vector<32x32xf32>
    %cst = arith.constant dense<0.000000e+00> : vector<8x32xf32>
    %2 = tpu.matmul %0, %1, %cst {dimension_numbers = #tpu.dot_dimension_numbers<[1], [0], [0], [1], [0, 0, 1, 1], [], []>} : vector<8x32xf32>, vector<32x32xf32>, vector<8x32xf32> -> vector<8x32xf32>
    %c0_3 = arith.constant 0 : index
    %c0_4 = arith.constant 0 : index
    %3 = vector.load %arg3[%c0_3, %c0_4] : memref<1x32xf32, #tpu.memory_space<vmem>>, vector<1x32xf32>
    %4 = vector.broadcast %3 : vector<1x32xf32> to vector<8x32xf32>
    %5 = arith.addf %2, %4 : vector<8x32xf32>
    %cst_5 = arith.constant 0.000000e+00 : f32
    %6 = vector.broadcast %cst_5 : f32 to vector<8x32xf32>
    %7 = arith.maximumf %5, %6 : vector<8x32xf32>
    %c0_6 = arith.constant 0 : index
    %c0_7 = arith.constant 0 : index
    %8 = vector.load %arg4[%c0_6, %c0_7] : memref<32x32xf32, #tpu.memory_space<vmem>>, vector<32x32xf32>
    %cst_8 = arith.constant dense<0.000000e+00> : vector<8x32xf32>
    %9 = tpu.matmul %7, %8, %cst_8 {dimension_numbers = #tpu.dot_dimension_numbers<[1], [0], [0], [1], [0, 0, 1, 1], [], []>} : vector<8x32xf32>, vector<32x32xf32>, vector<8x32xf32> -> vector<8x32xf32>
    %c0_9 = arith.constant 0 : index
    %c0_10 = arith.constant 0 : index
    %10 = vector.load %arg5[%c0_9, %c0_10] : memref<1x32xf32, #tpu.memory_space<vmem>>, vector<1x32xf32>
    %11 = vector.broadcast %10 : vector<1x32xf32> to vector<8x32xf32>
    %12 = arith.addf %9, %11 : vector<8x32xf32>
    %cst_11 = arith.constant 0.000000e+00 : f32
    %13 = vector.broadcast %cst_11 : f32 to vector<8x32xf32>
    %14 = arith.maximumf %12, %13 : vector<8x32xf32>
    %c0_12 = arith.constant 0 : index
    %c0_13 = arith.constant 0 : index
    %15 = vector.load %arg6[%c0_12, %c0_13] : memref<32x4xf32, #tpu.memory_space<vmem>>, vector<32x4xf32>
    %cst_14 = arith.constant dense<0.000000e+00> : vector<8x4xf32>
    %16 = tpu.matmul %14, %15, %cst_14 {dimension_numbers = #tpu.dot_dimension_numbers<[1], [0], [0], [1], [0, 0, 1, 1], [], []>} : vector<8x32xf32>, vector<32x4xf32>, vector<8x4xf32> -> vector<8x4xf32>
    %c0_15 = arith.constant 0 : index
    %c0_16 = arith.constant 0 : index
    %17 = vector.load %arg7[%c0_15, %c0_16] : memref<1x4xf32, #tpu.memory_space<vmem>>, vector<1x4xf32>
    %18 = vector.broadcast %17 : vector<1x4xf32> to vector<8x4xf32>
    %19 = arith.addf %16, %18 : vector<8x4xf32>
    %20 = math.tanh %19 : vector<8x4xf32>
    %c0_17 = arith.constant 0 : index
    %c0_18 = arith.constant 0 : index
    %21 = vector.load %arg8[%c0_17, %c0_18] : memref<8x4xf32, #tpu.memory_space<vmem>>, vector<8x4xf32>
    tpu.vector_store %arg8[%c0_17, %c0_18], %20 {strides = array<i32>} : memref<8x4xf32, #tpu.memory_space<vmem>>, vector<8x4xf32>,
    return
  }
  func.func @transform_0(%arg0: i32) -> (i32, i32) {
    %c0_i32 = arith.constant 0 : i32
    %c0_i32_0 = arith.constant 0 : i32
    return %arg0, %c0_i32 : i32, i32
  }
  func.func @transform_1(%arg0: i32) -> (i32, i32) {
    %c0_i32 = arith.constant 0 : i32
    %c0_i32_0 = arith.constant 0 : i32
    %c0_i32_1 = arith.constant 0 : i32
    return %c0_i32, %c0_i32_0 : i32, i32
  }
  func.func @transform_2(%arg0: i32) -> (i32, i32) {
    %c0_i32 = arith.constant 0 : i32
    %c0_i32_0 = arith.constant 0 : i32
    %c0_i32_1 = arith.constant 0 : i32
    return %c0_i32, %c0_i32_0 : i32, i32
  }
  func.func @transform_3(%arg0: i32) -> (i32, i32) {
    %c0_i32 = arith.constant 0 : i32
    %c0_i32_0 = arith.constant 0 : i32
    %c0_i32_1 = arith.constant 0 : i32
    return %c0_i32, %c0_i32_0 : i32, i32
  }
  func.func @transform_4(%arg0: i32) -> (i32, i32) {
    %c0_i32 = arith.constant 0 : i32
    %c0_i32_0 = arith.constant 0 : i32
    %c0_i32_1 = arith.constant 0 : i32
    return %c0_i32, %c0_i32_0 : i32, i32
  }
  func.func @transform_5(%arg0: i32) -> (i32, i32) {
    %c0_i32 = arith.constant 0 : i32
    %c0_i32_0 = arith.constant 0 : i32
    %c0_i32_1 = arith.constant 0 : i32
    return %c0_i32, %c0_i32_0 : i32, i32
  }
  func.func @transform_6(%arg0: i32) -> (i32, i32) {
    %c0_i32 = arith.constant 0 : i32
    %c0_i32_0 = arith.constant 0 : i32
    %c0_i32_1 = arith.constant 0 : i32
    return %c0_i32, %c0_i32_0 : i32, i32
  }
  func.func @transform_7(%arg0: i32) -> (i32, i32) {
    %c0_i32 = arith.constant 0 : i32
    %c0_i32_0 = arith.constant 0 : i32
    return %arg0, %c0_i32 : i32, i32
  }
}

</mosaic_0001>

<bundles_post_ra>
// kernel: tpu_custom_call.1
= control target key start
LH: loop header
LB: loop body
LE: loop exit
PB: predicated region body
PF: predicated region fallthrough
CT: control target
= control target key end

     0   :  { %12 = vsyncpa [#allocation3], 0  ;;  %s315_s0 = inlined_call_operand.hbm [shape: f32[8,32], index: 0, kind: input, shape index: {}]   ;;  %s316_s1 = inlined_call_operand.vmem [shape: f32[32,32], index: 1, kind: input, shape index: {}]   ;;  %s317_s2 = inlined_call_operand.vmem [shape: f32[1,32], index: 2, kind: input, shape index: {}]   ;;  %s318_s3 = inlined_call_operand.hbm [shape: f32[32,32], index: 3, kind: input, shape index: {}]   ;;  %s319_s4 = inlined_call_operand.vmem [shape: f32[1,32], index: 4, kind: input, shape index: {}]   ;;  %s320_s5 = inlined_call_operand.vmem [shape: f32[32,4], index: 5, kind: input, shape index: {}]   ;;  %s321_s6 = inlined_call_operand.vmem [shape: f32[1,4], index: 6, kind: input, shape index: {}]   ;;  %s322_s7 = inlined_call_operand.vmem [shape: f32[8,4], index: 7, kind: output, shape index: {}]  }
   0x1   :  { %s19_s26 = sshll.u32 %s315_s0, 4  ;;  %s20_s26 = int_to_ptr.hbm [resolvable:$true] %s19_s26 }
   0x2   :  { %13 = vsyncpa [#allocation5], 0  ;;  %s226_s27 = smov [#allocation2]   ;;  %s33_s8 = sshll.u32 %s318_s3, 4  ;;  %s34_s8 = int_to_ptr.hbm [resolvable:$true] %s33_s8 }
   0x3   :  { %s21_s28 = sshll.u32 %s226_s27, 4  ;;  %s227_s9 = smov [#allocation4]   ;;  %s22_s28 = int_to_ptr.vmem [resolvable:$true] %s21_s28 }
   0x4   :  { %24 = dma.hbm_to_vmem [thread:$0]  %s20_s26, 128, %s22_s28, [#allocation3]  }
   0x5   :  { %s35_s10 = sshll.u32 %s227_s9, 4  ;;  %s228_s11 = smov 128   ;;  %s36_s10 = int_to_ptr.vmem [resolvable:$true] %s35_s10 }
   0x6   :  { %s229_s12 = smov 8  }
   0x7   :  { %41 = dma.hbm_to_vmem [thread:$0]  %s34_s8, 512, %s36_s10, [#allocation5], %s228_s11, %s228_s11, %s229_s12  }
   0x8   :  { %222 = dma.done.wait [#allocation3], 128  }
   0x9   :  { %223 = vsyncadd [#allocation3], 4294967168 }
   0xa   :  { %224 = dma.done.wait [#allocation5], 512  }
   0xb   :  { %225 = vsyncadd [#allocation5], 4294966784  ;;  %v60_v0 = vld [vmem:[%s316_s1 + $0x18] sm:$0xff]  ;;  %v59_v1 = vld [vmem:[%s316_s1 + $0x10] sm:$0xff]  ;;  %vm65_vm0 = vcmask 261120   ;;  %vm154_vm1 = vcmask 31744  }
   0xc   :  { %81 = vmatpush.msra.mxu0 %v60_v0  ;;  %v93_v2 = vld [vmem:[#allocation4 + $0x18] sm:$0xff]  ;;  %v58_v3 = vld [vmem:[%s316_s1 + $0x8] sm:$0xff]  ;;  %v92_v6 = vld [vmem:[#allocation4 + $0x10] sm:$0xff] }
   0xd   :  { %113 = vmatpush.msra.mxu1 %v93_v2  ;;  %v57_v4 = vld [vmem:[%s316_s1] sm:$0xff]  ;;  %v91_v7 = vld [vmem:[#allocation4 + $0x8] sm:$0xff]  ;;  %v90_v8 = vld [vmem:[#allocation4] sm:$0xff] }
   0xe   :  { %82 = vmatpush.msra.mxu0 %v59_v1  ;;  %v56_v5 = vld [vmem:[#allocation2] sm:$0xff]  ;;  %v125_v9 = vld [vmem:[%s320_s5 + $0x18] sm:$0xff]  ;;  %v124_v14 = vld [vmem:[%s320_s5 + $0x10] sm:$0xff] }
   0xf   :  { %114 = vmatpush.msra.mxu1 %v92_v6  ;;  %145 = vmatpush.msra.mxu2 %v125_v9  ;;  %v169_v10 = vld [vmem:[%s317_s2] ss:$0 sm:$0xff]  ;;  %v123_v15 = vld [vmem:[%s320_s5 + $0x8] sm:$0xff] }
  0x10   :  { %83 = vmatpush.msra.mxu0 %v58_v3  ;;  %v122_v16 = vld [vmem:[%s320_s5] sm:$0xff] }
  0x11   :  { %115 = vmatpush.msra.mxu1 %v91_v7  ;;  %146 = vmatpush.msra.mxu2 %v124_v14  ;;  %v170_v17 = vld [vmem:[%s319_s4] ss:$0 sm:$0xff] }
  0x12   :  { %84 = vmatpush.msra.mxu0 %v57_v4  ;;  %v171_v21 = vld [vmem:[%s321_s6] ss:$0 sm:$0xff] }
  0x13   :  { %162 = vmatmul.msk.f32.vlgmr.msra.gmra.mxu0 %vm65_vm0, %v56_v5  ;;  %116 = vmatpush.msra.mxu1 %v90_v8 }
  0x14   :  { %147 = vmatpush.msra.mxu2 %v123_v15 }
  0x16   :  { %148 = vmatpush.msra.mxu2 %v122_v16 }
  0x90   :  { %v86_v11 = vpop.f32.mrf.mxu0 }
  0x91   :  { %v87_v12 = vadd.f32 %v169_v10, %v86_v11 }
  0x93   :  { %v89_v13 = vmax.f32 %v87_v12, 0.0 }
  0x95   :  { %163 = vmatmul.msk.f32.vlgmr.msra.gmra.mxu1 %vm65_vm0, %v89_v13 }
 0x112   :  { %v118_v18 = vpop.f32.mrf.mxu1 }
 0x113   :  { %v119_v19 = vadd.f32 %v170_v17, %v118_v18 }
 0x115   :  { %v121_v20 = vmax.f32 %v119_v19, 0.0 }
 0x117   :  { %164 = vmatmul.msk.f32.vlgmr.msra.gmra.mxu2 %vm65_vm0, %v121_v20 }
 0x19a   :  { %v150_v22 = vpop.f32.mrf.mxu2 }
 0x19b   :  { %v151_v23 = vadd.f32 %v171_v21, %v150_v22 }
 0x19d   :  { %172 = vtanh.f32 %v151_v23 }
 0x1a3   :  { %v173_v24 = vpop.eup %172 }
 0x1a4   :  { %155 = vst.msk [vmem:[%s322_s7] sm:$0xff] %vm154_vm1, %v173_v24 }
 0x1a5   :  { %160 = vsyncpa [#allocation3], 1 }
 0x1a6   :  { %161 = vsyncpa [#allocation5], 1 }

</bundles_post_ra>
